<compile_context>
chip_gen: v7x
topology: tpu7x:2x2x1
jax: 0.10.0
libtpu: 0.0.40
codegen_flags: <defaults>
</compile_context>

<pallas_src>
import functools
import math

import jax
import jax.numpy as jnp
from jax.experimental import pallas as pl
from jax.experimental.pallas import tpu as pltpu


def _round_up(v, m):
    return (v + m - 1) // m * m


def _vmem_capacity_bytes():
    """Physical VMEM of the current chip; conservative 64 MiB (v7x) fallback."""
    try:
        return int(pltpu.get_tpu_info().vmem_capacity_bytes)
    except Exception:
        return 64 << 20


# ---------------------------------------------------------------------------
# Kernel 1: h = x @ wl ; base = x @ wr + bl - mask * h
# grid = (row tiles, c_in reduction tiles), f32 accumulator scratch.
# ---------------------------------------------------------------------------
def _proj_kernel(x_ref, wcat_ref, bl_ref, mask_ref, h_ref, base_ref, acc_ref,
                 *, c_out_pad):
    k = pl.program_id(1)

    @pl.when(k == 0)
    def _():
        acc_ref[...] = jnp.zeros_like(acc_ref)

    acc_ref[...] += jnp.dot(x_ref[...], wcat_ref[...],
                            preferred_element_type=jnp.float32)

    @pl.when(k == pl.num_programs(1) - 1)
    def _():
        hb = acc_ref[...]
        h = hb[:, :c_out_pad]
        base = hb[:, c_out_pad:] + bl_ref[...] - mask_ref[...] * h
        h_ref[...] = h.astype(h_ref.dtype)
        base_ref[...] = base.astype(base_ref.dtype)


# ---------------------------------------------------------------------------
# Kernel 2: out = scale * (counts @ h) + base   (optionally L2-normalized)
# grid = (row tiles, reduction tiles), reduction axis last, f32 acc scratch.
# ---------------------------------------------------------------------------
def _agg_kernel(a_ref, h_ref, scale_ref, base_ref, out_ref, acc_ref,
                *, normalize, mxu_dtype, tile_n, h_resident):
    k = pl.program_id(1)

    @pl.when(k == 0)
    def _():
        acc_ref[...] = jnp.zeros_like(acc_ref)

    a = a_ref[...].astype(mxu_dtype)          # exact int8 counts -> MXU operand
    if h_resident:
        start = pl.multiple_of(k * tile_n, tile_n)
        h = h_ref[pl.ds(start, tile_n), :]    # slice of the VMEM-resident h
    else:
        h = h_ref[...]
    acc_ref[...] += jnp.dot(a, h, preferred_element_type=jnp.float32)

    @pl.when(k == pl.num_programs(1) - 1)
    def _():
        out = acc_ref[...] * scale_ref[...] + base_ref[...].astype(jnp.float32)
        if normalize:
            out = out * jax.lax.rsqrt(
                jnp.sum(out * out, axis=-1, keepdims=True) + 1e-12)
        out_ref[...] = out.astype(out_ref.dtype)


def diff_sage_forward(x, edge_index, params, *, normalize=False,
                      mxu_dtype=jnp.bfloat16, tile_n=512):
    """x: [N, C_in] float32, edge_index: [2, E] int32 (row0 = src/j, row1 = dst/i)."""
    n, c_in = x.shape
    wl, bl, wr = params["wl"], params["bl"], params["wr"]
    c_out = wl.shape[1]

    vmem_cap = _vmem_capacity_bytes()
    mx_bytes = jnp.dtype(mxu_dtype).itemsize
    out_bytes = jnp.dtype(x.dtype).itemsize

    # ---- tile / padding choices (single tile for rows & reduction -> no lcm blowup)
    c_in_pad = _round_up(c_in, 128)
    tile_c = c_in_pad if c_in_pad <= 1024 else 512
    c_in_pad = _round_up(c_in_pad, tile_c)
    c_out_pad = _round_up(c_out, 128)

    tile_req = max(int(tile_n), 256)
    n_pad = _round_up(n, 256)
    tile_n = max(t for t in (1024, 512, 256) if t <= tile_req and n_pad % t == 0)
    tile_m1 = min(256, n_pad)                               # kernel-1 row tile

    # ---- pad operands -------------------------------------------------------
    x_pad = jnp.pad(x, ((0, n_pad - n), (0, c_in_pad - c_in)))
    wl_pad = jnp.pad(wl, ((0, c_in_pad - c_in), (0, c_out_pad - c_out)))
    wr_pad = jnp.pad(wr, ((0, c_in_pad - c_in), (0, c_out_pad - c_out)))
    bl_pad = jnp.pad(bl, ((0, 0), (0, c_out_pad - c_out))).astype(jnp.float32)
    w_cat = jnp.concatenate([wl_pad, wr_pad], axis=1)       # [c_in_pad, 2*c_out_pad]

    # ---- adjacency as exact int8 edge counts + f32 per-row scale ------------
    # TODO(synk): for production graph sizes cache this across calls / build it with a
    #             sparse scalar-prefetch scatter kernel instead of dense O(N^2) XLA glue;
    #             int8 assumes edge multiplicity <= 127 (use fp8 counts on v7x).
    src = edge_index[0].astype(jnp.int32)
    dst = edge_index[1].astype(jnp.int32)
    counts32 = jnp.zeros((n_pad, n_pad), jnp.int32).at[dst, src].add(1)
    deg = jnp.sum(counts32, axis=1).astype(jnp.float32)      # in-degree [n_pad]
    scale = (1.0 / jnp.maximum(deg, 1.0)).reshape(n_pad, 1)  # f32 row scale
    mask = (deg > 0).astype(jnp.float32).reshape(n_pad, 1)   # subtract x_i iff deg>0
    a_counts = counts32.astype(jnp.int8)                     # 1-byte HBM stream

    x_mx = x_pad.astype(mxu_dtype)
    w_mx = w_cat.astype(mxu_dtype)

    # ---- kernel 1: fused projections ----------------------------------------
    grid1 = (n_pad // tile_m1, c_in_pad // tile_c)
    k1_vmem = (2 * tile_m1 * tile_c * mx_bytes               # x tiles
               + 2 * tile_c * 2 * c_out_pad * mx_bytes       # w_cat tiles
               + 2 * c_out_pad * 4                           # bias
               + 2 * tile_m1 * 4                             # mask
               + 2 * 2 * tile_m1 * c_out_pad * mx_bytes      # h + base out tiles
               + tile_m1 * 2 * c_out_pad * 4)                # f32 acc scratch
    vmem_limit1 = int(min(max(k1_vmem + (8 << 20), 32 << 20), vmem_cap * 3 // 4))

    h, base = pl.pallas_call(
        functools.partial(_proj_kernel, c_out_pad=c_out_pad),
        out_shape=(jax.ShapeDtypeStruct((n_pad, c_out_pad), mxu_dtype),
                   jax.ShapeDtypeStruct((n_pad, c_out_pad), mxu_dtype)),
        grid_spec=pltpu.PrefetchScalarGridSpec(
            num_scalar_prefetch=0,
            grid=grid1,
            in_specs=[
                pl.BlockSpec((tile_m1, tile_c), lambda i, k: (i, k)),
                pl.BlockSpec((tile_c, 2 * c_out_pad), lambda i, k: (k, 0)),
                pl.BlockSpec((1, c_out_pad), lambda i, k: (0, 0)),
                pl.BlockSpec((tile_m1, 1), lambda i, k: (i, 0)),
            ],
            out_specs=[
                pl.BlockSpec((tile_m1, c_out_pad), lambda i, k: (i, 0)),
                pl.BlockSpec((tile_m1, c_out_pad), lambda i, k: (i, 0)),
            ],
            scratch_shapes=[pltpu.VMEM((tile_m1, 2 * c_out_pad), jnp.float32)]),
        compiler_params=pltpu.CompilerParams(
            dimension_semantics=("parallel", "arbitrary"),
            vmem_limit_bytes=vmem_limit1),
    )(x_mx, w_mx, bl_pad, mask)

    # ---- kernel 2: tiled out = scale * (counts @ h) + base -------------------
    grid2 = (n_pad // tile_n, n_pad // tile_n)

    h_bytes = n_pad * c_out_pad * mx_bytes
    fixed2 = (2 * tile_n * tile_n * 1                        # int8 A, double-buffered
              + 2 * tile_n * 4                               # scale
              + 2 * tile_n * c_out_pad * mx_bytes            # base
              + 2 * tile_n * c_out_pad * out_bytes           # out
              + tile_n * c_out_pad * 4)                      # f32 acc scratch
    h_budget = min(vmem_cap // 2, vmem_cap * 3 // 4 - fixed2 - (8 << 20))
    h_resident = (2 * h_bytes) <= h_budget                   # keep h in VMEM if it fits
    h_buf_bytes = 2 * h_bytes if h_resident else 2 * tile_n * c_out_pad * mx_bytes
    vmem_limit2 = int(min(max(fixed2 + h_buf_bytes + (8 << 20), 32 << 20),
                          vmem_cap * 3 // 4))

    if h_resident:
        h_spec = pl.BlockSpec((n_pad, c_out_pad), lambda i, k: (0, 0))
    else:
        h_spec = pl.BlockSpec((tile_n, c_out_pad), lambda i, k: (k, 0))

    kernel2 = functools.partial(_agg_kernel, normalize=normalize,
                                mxu_dtype=mxu_dtype, tile_n=tile_n,
                                h_resident=h_resident)
    out_pad = pl.pallas_call(
        kernel2,
        out_shape=jax.ShapeDtypeStruct((n_pad, c_out_pad), x.dtype),
        grid_spec=pltpu.PrefetchScalarGridSpec(
            num_scalar_prefetch=0,
            grid=grid2,
            in_specs=[
                pl.BlockSpec((tile_n, tile_n), lambda i, k: (i, k)),
                h_spec,
                pl.BlockSpec((tile_n, 1), lambda i, k: (i, 0)),
                pl.BlockSpec((tile_n, c_out_pad), lambda i, k: (i, 0)),
            ],
            out_specs=pl.BlockSpec((tile_n, c_out_pad), lambda i, k: (i, 0)),
            scratch_shapes=[pltpu.VMEM((tile_n, c_out_pad), jnp.float32)]),
        compiler_params=pltpu.CompilerParams(
            dimension_semantics=("parallel", "arbitrary"),
            vmem_limit_bytes=vmem_limit2),
    )(a_counts, h, scale, base)

    return out_pad[:n, :c_out]


def init_params(key, in_channels, out_channels):
    k1, k2, k3 = jax.random.split(key, 3)
    scale = 1.0 / math.sqrt(in_channels)
    # weights stored as [C_in, C_out] (transposed vs torch Linear.weight)
    wl = jax.random.uniform(k1, (in_channels, out_channels), jnp.float32,
                            -scale, scale)
    bl = jax.random.uniform(k2, (1, out_channels), jnp.float32, -scale, scale)
    wr = jax.random.uniform(k3, (in_channels, out_channels), jnp.float32,
                            -scale, scale)
    return {"wl": wl, "bl": bl, "wr": wr}


def _reference(x, edge_index, params):
    # Pure-JAX reference of DiffSAGEConv.forward (aggr='mean', normalize=False).
    src, dst = edge_index[0], edge_index[1]
    n = x.shape[0]
    msg = x[src] - x[dst]                                    # x_j - x_i
    summed = jnp.zeros((n, x.shape[1]), x.dtype).at[dst].add(msg)
    cnt = jnp.zeros((n, 1), x.dtype).at[dst].add(1.0)
    aggr = summed / jnp.maximum(cnt, 1.0)
    out = aggr @ params["wl"] + params["bl"] + x @ params["wr"]
    return out


# TODO(synk): aggr='lstm' / MultiAggregation and the optional `transform` module are
#             not implemented (only the default aggr='mean').

if __name__ == "__main__":
    key = jax.random.PRNGKey(0)
    kx, kp = jax.random.split(key)

    N, E = 16, 48
    IN_CH, OUT_CH = 32, 32

    x = jax.random.normal(kx, (N, IN_CH), jnp.float32)
    # deterministic synthetic edge list: src -> dst
    e = jnp.arange(E, dtype=jnp.int32)
    src = e % N
    dst = (3 * e + 1) % N
    edge_index = jnp.stack([src, dst], axis=0)               # [2, E]

    params = init_params(kp, IN_CH, OUT_CH)
    ref = _reference(x, edge_index, params)

    # Default path: bf16 MXU operands, int8 counts, f32 accumulation.
    out_bf16 = jax.block_until_ready(diff_sage_forward(x, edge_index, params))
    assert out_bf16.shape == (N, OUT_CH)
    assert jnp.allclose(out_bf16, ref, atol=5e-2, rtol=5e-2), \
        "bf16-MXU path mismatch vs reference"

    # Full-f32 path for a tight numerical check of the kernel algebra.
    out_f32 = jax.block_until_ready(
        diff_sage_forward(x, edge_index, params, mxu_dtype=jnp.float32))
    assert jnp.allclose(out_f32, ref, atol=1e-4, rtol=1e-4), \
        "f32 path mismatch vs reference"

    print("KERNEL_OK")
</pallas_src>

<mosaic_0001>
module attributes {stable_mosaic.version = 11 : i64} {
  func.func @_proj_kernel(%arg0: i32, %arg1: i32, %arg2: memref<256x128xbf16, #tpu.memory_space<vmem>>, %arg3: memref<128x256xbf16, #tpu.memory_space<vmem>>, %arg4: memref<1x128xf32, #tpu.memory_space<vmem>>, %arg5: memref<256x1xf32, #tpu.memory_space<vmem>>, %arg6: memref<256x128xbf16, #tpu.memory_space<vmem>>, %arg7: memref<256x128xbf16, #tpu.memory_space<vmem>>, %arg8: memref<256x256xf32, #tpu.memory_space<vmem>>) attributes {dimension_semantics = [#tpu.dimension_semantics<parallel>, #tpu.dimension_semantics<arbitrary>], iteration_bounds = array<i64: 1, 1>, scalar_prefetch = 0 : i64, scratch_operands = 1 : i64, tpu.core_type = #tpu.core_type<tc>, window_params = [{transform_indices = @transform_0, window_bounds = array<i64: 256, 128>}, {transform_indices = @transform_1, window_bounds = array<i64: 128, 256>}, {pipeline_mode = #tpu.pipeline_mode<synchronous>, transform_indices = @transform_2, window_bounds = array<i64: 1, 128>}, {transform_indices = @transform_3, window_bounds = array<i64: 256, 1>}, {transform_indices = @transform_4, window_bounds = array<i64: 256, 128>}, {transform_indices = @transform_5, window_bounds = array<i64: 256, 128>}]} {
    %c0_i32 = arith.constant 0 : i32
    %0 = arith.cmpi eq, %arg1, %c0_i32 : i32
    %1 = arith.extui %0 : i1 to i32
    %c0_i32_0 = arith.constant 0 : i32
    %2 = arith.cmpi ne, %1, %c0_i32_0 : i32
    scf.if %2 {
      %cst_10 = arith.constant 0.000000e+00 : f32
      %12 = vector.broadcast %cst_10 : f32 to vector<256x256xf32>
      %c0_11 = arith.constant 0 : index
      %c0_12 = arith.constant 0 : index
      %13 = vector.load %arg8[%c0_11, %c0_12] : memref<256x256xf32, #tpu.memory_space<vmem>>, vector<256x256xf32>
      tpu.vector_store %arg8[%c0_11, %c0_12], %12 {strides = array<i32>} : memref<256x256xf32, #tpu.memory_space<vmem>>, vector<256x256xf32>,
    } else {
    }
    %c0 = arith.constant 0 : index
    %c0_1 = arith.constant 0 : index
    %3 = vector.load %arg8[%c0, %c0_1] : memref<256x256xf32, #tpu.memory_space<vmem>>, vector<256x256xf32>
    %c0_2 = arith.constant 0 : index
    %c0_3 = arith.constant 0 : index
    %4 = vector.load %arg2[%c0_2, %c0_3] : memref<256x128xbf16, #tpu.memory_space<vmem>>, vector<256x128xbf16>
    %c0_4 = arith.constant 0 : index
    %c0_5 = arith.constant 0 : index
    %5 = vector.load %arg3[%c0_4, %c0_5] : memref<128x256xbf16, #tpu.memory_space<vmem>>, vector<128x256xbf16>
    %cst = arith.constant dense<0.000000e+00> : vector<256x256xf32>
    %6 = tpu.matmul %4, %5, %cst {dimension_numbers = #tpu.dot_dimension_numbers<[1], [0], [0], [1], [0, 0, 1, 1], [], []>} : vector<256x128xbf16>, vector<128x256xbf16>, vector<256x256xf32> -> vector<256x256xf32>
    %7 = arith.addf %3, %6 : vector<256x256xf32>
    %c0_6 = arith.constant 0 : index
    %c0_7 = arith.constant 0 : index
    %8 = vector.load %arg8[%c0_6, %c0_7] : memref<256x256xf32, #tpu.memory_space<vmem>>, vector<256x256xf32>
    tpu.vector_store %arg8[%c0_6, %c0_7], %7 {strides = array<i32>} : memref<256x256xf32, #tpu.memory_space<vmem>>, vector<256x256xf32>,
    %c0_i32_8 = arith.constant 0 : i32
    %9 = arith.cmpi eq, %arg1, %c0_i32_8 : i32
    %10 = arith.extui %9 : i1 to i32
    %c0_i32_9 = arith.constant 0 : i32
    %11 = arith.cmpi ne, %10, %c0_i32_9 : i32
    scf.if %11 {
      %c0_10 = arith.constant 0 : index
      %c0_11 = arith.constant 0 : index
      %12 = vector.load %arg8[%c0_10, %c0_11] : memref<256x256xf32, #tpu.memory_space<vmem>>, vector<256x256xf32>
      %13 = vector.extract_strided_slice %12 {offsets = [0, 0], sizes = [256, 128], strides = [1, 1]} : vector<256x256xf32> to vector<256x128xf32>
      %14 = vector.extract_strided_slice %12 {offsets = [0, 128], sizes = [256, 128], strides = [1, 1]} : vector<256x256xf32> to vector<256x128xf32>
      %c0_12 = arith.constant 0 : index
      %c0_13 = arith.constant 0 : index
      %15 = vector.load %arg4[%c0_12, %c0_13] : memref<1x128xf32, #tpu.memory_space<vmem>>, vector<1x128xf32>
      %16 = vector.broadcast %15 : vector<1x128xf32> to vector<256x128xf32>
      %17 = arith.addf %14, %16 : vector<256x128xf32>
      %c0_14 = arith.constant 0 : index
      %c0_15 = arith.constant 0 : index
      %18 = vector.load %arg5[%c0_14, %c0_15] : memref<256x1xf32, #tpu.memory_space<vmem>>, vector<256x1xf32>
      %19 = vector.broadcast %18 : vector<256x1xf32> to vector<256x128xf32>
      %20 = arith.mulf %19, %13 : vector<256x128xf32>
      %21 = arith.subf %17, %20 : vector<256x128xf32>
      %22 = arith.truncf %13 : vector<256x128xf32> to vector<256x128xbf16>
      %c0_16 = arith.constant 0 : index
      %c0_17 = arith.constant 0 : index
      %23 = vector.load %arg6[%c0_16, %c0_17] : memref<256x128xbf16, #tpu.memory_space<vmem>>, vector<256x128xbf16>
      tpu.vector_store %arg6[%c0_16, %c0_17], %22 {strides = array<i32>} : memref<256x128xbf16, #tpu.memory_space<vmem>>, vector<256x128xbf16>,
      %24 = arith.truncf %21 : vector<256x128xf32> to vector<256x128xbf16>
      %c0_18 = arith.constant 0 : index
      %c0_19 = arith.constant 0 : index
      %25 = vector.load %arg7[%c0_18, %c0_19] : memref<256x128xbf16, #tpu.memory_space<vmem>>, vector<256x128xbf16>
      tpu.vector_store %arg7[%c0_18, %c0_19], %24 {strides = array<i32>} : memref<256x128xbf16, #tpu.memory_space<vmem>>, vector<256x128xbf16>,
    } else {
    }
    return
  }
  func.func @transform_0(%arg0: i32, %arg1: i32) -> (i32, i32) {
    %c0_i32 = arith.constant 0 : i32
    return %arg0, %arg1 : i32, i32
  }
  func.func @transform_1(%arg0: i32, %arg1: i32) -> (i32, i32) {
    %c0_i32 = arith.constant 0 : i32
    %c0_i32_0 = arith.constant 0 : i32
    return %arg1, %c0_i32 : i32, i32
  }
  func.func @transform_2(%arg0: i32, %arg1: i32) -> (i32, i32) {
    %c0_i32 = arith.constant 0 : i32
    %c0_i32_0 = arith.constant 0 : i32
    %c0_i32_1 = arith.constant 0 : i32
    return %c0_i32, %c0_i32_0 : i32, i32
  }
  func.func @transform_3(%arg0: i32, %arg1: i32) -> (i32, i32) {
    %c0_i32 = arith.constant 0 : i32
    %c0_i32_0 = arith.constant 0 : i32
    return %arg0, %c0_i32 : i32, i32
  }
  func.func @transform_4(%arg0: i32, %arg1: i32) -> (i32, i32) {
    %c0_i32 = arith.constant 0 : i32
    %c0_i32_0 = arith.constant 0 : i32
    return %arg0, %c0_i32 : i32, i32
  }
  func.func @transform_5(%arg0: i32, %arg1: i32) -> (i32, i32) {
    %c0_i32 = arith.constant 0 : i32
    %c0_i32_0 = arith.constant 0 : i32
    return %arg0, %c0_i32 : i32, i32
  }
}

</mosaic_0001>

<bundles_post_ra>
// kernel: tpu_custom_call.1
= control target key start
LH: loop header
LB: loop body
LE: loop exit
PB: predicated region body
PF: predicated region fallthrough
CT: control target
= control target key end

     0   :  { %11 = vsyncpa [#allocation4], 0  ;;  %v1875_v2 = vmov 0   ;;  %s2224_s0 = inlined_call_operand.vmem [shape: bf16[256,128], index: 0, kind: input, shape index: {}]   ;;  %s2225_s1 = inlined_call_operand.vmem [shape: bf16[128,256], index: 1, kind: input, shape index: {}]   ;;  %s2226_s2 = inlined_call_operand.vmem [shape: f32[1,128], index: 2, kind: input, shape index: {}]   ;;  %s2227_s3 = inlined_call_operand.vmem [shape: f32[256,1], index: 3, kind: input, shape index: {}]   ;;  %s2228_s4 = inlined_call_operand.hbm [shape: bf16[256,128], index: 4, kind: output, shape index: {0}]   ;;  %s2229_s5 = inlined_call_operand.hbm [shape: bf16[256,128], index: 5, kind: output, shape index: {1}]  }
   0x1   :  { %v1787_v0 = vld [vmem:[%s2225_s1 + $0x4] ss:$8 sps:$4 sm:$0xff]   ;;  %v1789_v1 = vld [vmem:[%s2225_s1] ss:$8 sps:$4 sm:$0xff]   ;;  %410 = vmatprep.mubr.bf16.mxu0 %v1875_v2  ;;  %490 = vmatprep.mubr.bf16.mxu1 %v1875_v2  ;;  %v1790_v3 = vld [vmem:[%s2225_s1 + $0x14] ss:$8 sps:$4 sm:$0xff]  }
   0x2   :  { %378 = vmatprep.subr.bf16.mxu0 %v1787_v0  ;;  %1764 = vmatprep.subr.bf16.mxu1 %v1787_v0  ;;  %v1792_v4 = vld [vmem:[%s2225_s1 + $0x10] ss:$8 sps:$4 sm:$0xff]   ;;  %v1793_v5 = vld [vmem:[%s2225_s1 + $0x24] ss:$8 sps:$4 sm:$0xff]   ;;  %v1795_v6 = vld [vmem:[%s2225_s1 + $0x20] ss:$8 sps:$4 sm:$0xff]  }
   0x3   :  { %379 = vmatpush1.bf16.msra.mxu0 %v1789_v1  ;;  %1772 = vmatpush1.bf16.msra.mxu1 %v1789_v1  ;;  %v1796_v7 = vld [vmem:[%s2225_s1 + $0x34] ss:$8 sps:$4 sm:$0xff]   ;;  %v1798_v8 = vld [vmem:[%s2225_s1 + $0x30] ss:$8 sps:$4 sm:$0xff]   ;;  %v1799_v9 = vld [vmem:[%s2225_s1 + $0x44] ss:$8 sps:$4 sm:$0xff]  }
   0x4   :  { %380 = vmatprep.subr.bf16.mxu0 %v1790_v3  ;;  %1765 = vmatprep.subr.bf16.mxu1 %v1790_v3  ;;  %v1801_v10 = vld [vmem:[%s2225_s1 + $0x40] ss:$8 sps:$4 sm:$0xff]   ;;  %v1802_v11 = vld [vmem:[%s2225_s1 + $0x54] ss:$8 sps:$4 sm:$0xff]   ;;  %v1804_v14 = vld [vmem:[%s2225_s1 + $0x50] ss:$8 sps:$4 sm:$0xff]  }
   0x5   :  { %1786 = vset.pattern.permute.xlu1 %v1875_v2  ;;  %1785 = vset.pattern.permute.xlu0 %v1875_v2  ;;  %v807_v12 = vld [vmem:[%s2227_s3 + $0x10] sm:$0xff]  ;;  %v805_v13 = vld [vmem:[%s2227_s3] sm:$0xff]  ;;  %v808_v15 = vld [vmem:[%s2227_s3 + $0x18] sm:$0xff] }
   0x6   :  { %849 = vperm.xlu1 %1786, %v807_v12   ;;  %839 = vperm.xlu0 %1785, %v805_v13   ;;  %v806_v16 = vld [vmem:[%s2227_s3 + $0x8] sm:$0xff]  ;;  %v809_v20 = vld [vmem:[%s2227_s3 + $0x20] sm:$0xff]  ;;  %v1808_v21 = vld [vmem:[%s2225_s1 + $0x74] ss:$8 sps:$4 sm:$0xff]  }
   0x7   :  { %381 = vmatpush1.bf16.msra.mxu0 %v1792_v4  ;;  %1773 = vmatpush1.bf16.msra.mxu1 %v1792_v4  ;;  %v1805_v17 = vld [vmem:[%s2225_s1 + $0x64] ss:$8 sps:$4 sm:$0xff]   ;;  %v1807_v19 = vld [vmem:[%s2225_s1 + $0x60] ss:$8 sps:$4 sm:$0xff]   ;;  %v1810_v22 = vld [vmem:[%s2225_s1 + $0x70] ss:$8 sps:$4 sm:$0xff]  }
   0x8   :  { %382 = vmatprep.subr.bf16.mxu0 %v1793_v5  ;;  %1766 = vmatprep.subr.bf16.mxu1 %v1793_v5  ;;  %v810_v18 = vld [vmem:[%s2227_s3 + $0x28] sm:$0xff]  ;;  %v812_v23 = vld [vmem:[%s2227_s3 + $0x38] sm:$0xff]  ;;  %v811_v24 = vld [vmem:[%s2227_s3 + $0x30] sm:$0xff] }
   0x9   :  { %v1811_v25 = vld [vmem:[%s2224_s0] sm:$0xff]   ;;  %v814_v27 = vld [vmem:[%s2227_s3 + $0x48] sm:$0xff]  ;;  %v816_v29 = vld [vmem:[%s2227_s3 + $0x58] sm:$0xff] }
   0xa   :  { %854 = vperm.xlu1 %1786, %v808_v15   ;;  %844 = vperm.xlu0 %1785, %v806_v16   ;;  %v1812_v26 = vld [vmem:[%s2224_s0 + $0x40] sm:$0xff]   ;;  %v815_v30 = vld [vmem:[%s2227_s3 + $0x50] sm:$0xff] }
   0xb   :  { %383 = vmatpush1.bf16.msra.mxu0 %v1795_v6  ;;  %1774 = vmatpush1.bf16.msra.mxu1 %v1795_v6  ;;  %v813_v28 = vld [vmem:[%s2227_s3 + $0x40] sm:$0xff] }
   0xc   :  { %384 = vmatprep.subr.bf16.mxu0 %v1796_v7  ;;  %1767 = vmatprep.subr.bf16.mxu1 %v1796_v7 }
   0xe   :  { %864 = vperm.xlu1 %1786, %v810_v18   ;;  %859 = vperm.xlu0 %1785, %v809_v20  }
   0xf   :  { %385 = vmatpush1.bf16.msra.mxu0 %v1798_v8  ;;  %1775 = vmatpush1.bf16.msra.mxu1 %v1798_v8 }
  0x10   :  { %386 = vmatprep.subr.bf16.mxu0 %v1799_v9  ;;  %1768 = vmatprep.subr.bf16.mxu1 %v1799_v9 }
  0x12   :  { %874 = vperm.xlu1 %1786, %v812_v23   ;;  %869 = vperm.xlu0 %1785, %v811_v24  }
  0x13   :  { %387 = vmatpush1.bf16.msra.mxu0 %v1801_v10  ;;  %1776 = vmatpush1.bf16.msra.mxu1 %v1801_v10 }
  0x14   :  { %388 = vmatprep.subr.bf16.mxu0 %v1802_v11  ;;  %1769 = vmatprep.subr.bf16.mxu1 %v1802_v11 }
  0x16   :  { %884 = vperm.xlu1 %1786, %v814_v27   ;;  %879 = vperm.xlu0 %1785, %v813_v28  }
  0x17   :  { %389 = vmatpush1.bf16.msra.mxu0 %v1804_v14  ;;  %1777 = vmatpush1.bf16.msra.mxu1 %v1804_v14 }
  0x18   :  { %390 = vmatprep.subr.bf16.mxu0 %v1805_v17  ;;  %1770 = vmatprep.subr.bf16.mxu1 %v1805_v17 }
  0x1a   :  { %894 = vperm.xlu1 %1786, %v816_v29  }
  0x1b   :  { %391 = vmatpush1.bf16.msra.mxu0 %v1807_v19  ;;  %1778 = vmatpush1.bf16.msra.mxu1 %v1807_v19 }
  0x1c   :  { %392 = vmatprep.subr.bf16.mxu0 %v1808_v21  ;;  %1771 = vmatprep.subr.bf16.mxu1 %v1808_v21 }
  0x1f   :  { %393 = vmatpush1.bf16.msra.mxu0 %v1810_v22  ;;  %1779 = vmatpush1.bf16.msra.mxu1 %v1810_v22 }
  0x22   :  { %411 = vmatmul.mubr.bf16.vlgmr.msra.gmra.mrb[0].mxu0 %v1811_v25  ;;  %491 = vmatmul.mubr.bf16.vlgmr.msra.gmra.mrb[0].mxu1 %v1812_v26 }
  0x23   :  { %420 = vmatprep.mubr.bf16.mxu0 %v1875_v2  ;;  %500 = vmatprep.mubr.bf16.mxu1 %v1875_v2 }
  0x24   :  { %12 = vsyncpa [#allocation6], 0  ;;  %v1813_v31 = vld [vmem:[%s2224_s0 + $0x8] sm:$0xff]   ;;  %889 = vperm.xlu0 %1785, %v815_v30   ;;  %v817_v34 = vld [vmem:[%s2227_s3 + $0x60] sm:$0xff]  ;;  %s1877_s1 = smov [#allocation5]  }
  0x25   :  { %v1814_v32 = vld [vmem:[%s2224_s0 + $0x48] sm:$0xff]   ;;  %v820_v35 = vld [vmem:[%s2227_s3 + $0x78] sm:$0xff]  ;;  %v819_v36 = vld [vmem:[%s2227_s3 + $0x70] sm:$0xff]  ;;  %s1398_s19 = sshll.u32 %s1877_s1, 4  ;;  %s1399_s19 = int_to_ptr.vmem [resolvable:$true] %s1398_s19 }
  0x26   :  { %v818_v33 = vld [vmem:[%s2227_s3 + $0x68] sm:$0xff]  ;;  %v1815_v37 = vld [vmem:[%s2224_s0 + $0x10] sm:$0xff]   ;;  %v821_v40 = vld [vmem:[%s2227_s3 + $0x80] sm:$0xff] }
  0x27   :  { %904 = vperm.xlu1 %1786, %v818_v33   ;;  %v1816_v38 = vld [vmem:[%s2224_s0 + $0x50] sm:$0xff]   ;;  %v822_v39 = vld [vmem:[%s2227_s3 + $0x88] sm:$0xff]  ;;  %v824_v41 = vld [vmem:[%s2227_s3 + $0x98] sm:$0xff] }
  0x28   :  { %899 = vperm.xlu0 %1785, %v817_v34   ;;  %v823_v42 = vld [vmem:[%s2227_s3 + $0x90] sm:$0xff]  ;;  %v1817_v43 = vld [vmem:[%s2224_s0 + $0x18] sm:$0xff]   ;;  %v826_v45 = vld [vmem:[%s2227_s3 + $0xa8] sm:$0xff] }
  0x29   :  { %v1818_v44 = vld [vmem:[%s2224_s0 + $0x58] sm:$0xff]   ;;  %v825_v46 = vld [vmem:[%s2227_s3 + $0xa0] sm:$0xff]  ;;  %v827_v48 = vld [vmem:[%s2227_s3 + $0xb0] sm:$0xff] }
  0x2a   :  { %421 = vmatmul.mubr.bf16.gmra.mrb[4].mxu0 %v1813_v31  ;;  %501 = vmatmul.mubr.bf16.gmra.mrb[4].mxu1 %v1814_v32  ;;  %v828_v47 = vld [vmem:[%s2227_s3 + $0xb8] sm:$0xff]  ;;  %v1819_v49 = vld [vmem:[%s2224_s0 + $0x20] sm:$0xff]   ;;  %v830_v51 = vld [vmem:[%s2227_s3 + $0xc8] sm:$0xff] }
  0x2b   :  { %430 = vmatprep.mubr.bf16.mxu0 %v1875_v2  ;;  %510 = vmatprep.mubr.bf16.mxu1 %v1875_v2  ;;  %v1820_v50 = vld [vmem:[%s2224_s0 + $0x60] sm:$0xff]   ;;  %v832_v53 = vld [vmem:[%s2227_s3 + $0xd8] sm:$0xff]  ;;  %v831_v54 = vld [vmem:[%s2227_s3 + $0xd0] sm:$0xff] }
  0x2c   :  { %914 = vperm.xlu1 %1786, %v820_v35   ;;  %909 = vperm.xlu0 %1785, %v819_v36   ;;  %v829_v52 = vld [vmem:[%s2227_s3 + $0xc0] sm:$0xff]  ;;  %v1821_v55 = vld [vmem:[%s2224_s0 + $0x28] sm:$0xff]   ;;  %v836_v59 = vld [vmem:[%s2227_s3 + $0xf8] sm:$0xff] }
  0x2d   :  { %v1822_v56 = vld [vmem:[%s2224_s0 + $0x68] sm:$0xff]   ;;  %v833_v58 = vld [vmem:[%s2227_s3 + $0xe0] sm:$0xff]  ;;  %v835_v60 = vld [vmem:[%s2227_s3 + $0xf0] sm:$0xff] }
  0x2e   :  { %v834_v57 = vld [vmem:[%s2227_s3 + $0xe8] sm:$0xff]  ;;  %v1823_v61 = vld [vmem:[%s2224_s0 + $0x30] sm:$0xff]   ;;  %v1825_v63 = vld [vmem:[%s2224_s0 + $0x38] sm:$0xff]  }
  0x2f   :  { %v1824_v62 = vld [vmem:[%s2224_s0 + $0x70] sm:$0xff]   ;;  %v1826_v0 = vld [vmem:[%s2224_s0 + $0x78] sm:$0xff]   ;;  %v2147_v19 = vld [vmem:[%s2226_s2] ss:$0 sm:$0xff]  ;;  %s1876_s2 = smov [#allocation3]  }
  0x30   :  { %924 = vperm.xlu1 %1786, %v822_v39   ;;  %919 = vperm.xlu0 %1785, %v821_v40   ;;  %s1386_s18 = sshll.u32 %s1876_s2, 4  ;;  %s2190_s18 = int_to_ptr.vmem [resolvable:$true] %s1386_s18 }
  0x31   :  { %s1827_s20 = scalar_lea.vmem %s2190_s18, 2048  ;;  %p1832_p1 = scmp.lt.s32.totalorder %s2190_s18, %s2190_s18 }
  0x32   :  { %431 = vmatmul.mubr.bf16.gmra.mrb[8].mxu0 %v1815_v37  ;;  %511 = vmatmul.mubr.bf16.gmra.mrb[8].mxu1 %v1816_v38  ;;  %p1828_p0 = scmp.ne.s32.totalorder %s2190_s18, %s1827_s20  ;;  %p1833_p2 = scmp.lt.s32.totalorder %s1827_s20, %s1827_s20 }
  0x33   :  { %440 = vmatprep.mubr.bf16.mxu0 %v1875_v2  ;;  %520 = vmatprep.mubr.bf16.mxu1 %v1875_v2 }
  0x34   :  { %934 = vperm.xlu1 %1786, %v824_v41   ;;  %929 = vperm.xlu0 %1785, %v823_v42   ;;  %p1834_p3 = por %p1833_p2, %p1832_p1 }
  0x36   :  { %p1835_p4 = pnand %p1834_p3, %p1828_p0 }
  0x38   :  { %944 = vperm.xlu1 %1786, %v826_v45   ;;  %939 = vperm.xlu0 %1785, %v825_v46  }
  0x3a   :  { %441 = vmatmul.mubr.bf16.gmra.mrb[12].mxu0 %v1817_v43  ;;  %521 = vmatmul.mubr.bf16.gmra.mrb[12].mxu1 %v1818_v44 }
  0x3b   :  { %450 = vmatprep.mubr.bf16.mxu0 %v1875_v2  ;;  %530 = vmatprep.mubr.bf16.mxu1 %v1875_v2 }
  0x3c   :  { %954 = vperm.xlu1 %1786, %v828_v47   ;;  %949 = vperm.xlu0 %1785, %v827_v48  }
  0x40   :  { %964 = vperm.xlu1 %1786, %v830_v51   ;;  %959 = vperm.xlu0 %1785, %v829_v52  }
  0x42   :  { %451 = vmatmul.mubr.bf16.gmra.mrb[16].mxu0 %v1819_v49  ;;  %531 = vmatmul.mubr.bf16.gmra.mrb[16].mxu1 %v1820_v50 }
  0x43   :  { %460 = vmatprep.mubr.bf16.mxu0 %v1875_v2  ;;  %540 = vmatprep.mubr.bf16.mxu1 %v1875_v2 }
  0x44   :  { %974 = vperm.xlu1 %1786, %v832_v53   ;;  %969 = vperm.xlu0 %1785, %v831_v54  }
  0x48   :  { %984 = vperm.xlu1 %1786, %v834_v57   ;;  %979 = vperm.xlu0 %1785, %v833_v58  }
  0x4a   :  { %461 = vmatmul.mubr.bf16.gmra.mrb[20].mxu0 %v1821_v55  ;;  %541 = vmatmul.mubr.bf16.gmra.mrb[20].mxu1 %v1822_v56 }
  0x4b   :  { %470 = vmatprep.mubr.bf16.mxu0 %v1875_v2  ;;  %550 = vmatprep.mubr.bf16.mxu1 %v1875_v2 }
  0x4c   :  { %994 = vperm.xlu1 %1786, %v836_v59   ;;  %989 = vperm.xlu0 %1785, %v835_v60  }
  0x52   :  { %471 = vmatmul.mubr.bf16.gmra.mrb[24].mxu0 %v1823_v61  ;;  %551 = vmatmul.mubr.bf16.gmra.mrb[24].mxu1 %v1824_v62 }
  0x53   :  { %480 = vmatprep.mubr.bf16.mxu0 %v1875_v2  ;;  %560 = vmatprep.mubr.bf16.mxu1 %v1875_v2 }
  0x5a   :  { %481 = vmatmul.mubr.bf16.gmra.mrb[28].mxu0 %v1825_v63  ;;  %561 = vmatmul.mubr.bf16.gmra.mrb[28].mxu1 %v1826_v0 }
  0x85   :  { %v850_v1 = vpop.permute.xlu1 %849  ;;  %v840_v3 = vpop.permute.xlu0 %839 }
  0x89   :  { %v855_v4 = vpop.permute.xlu1 %854  ;;  %v845_v5 = vpop.permute.xlu0 %844 }
  0x8d   :  { %v2120_v6 = vpop.permute.xlu1 %864  ;;  %v2122_v7 = vpop.permute.xlu0 %859 }
  0x91   :  { %v2124_v8 = vpop.permute.xlu1 %874  ;;  %v2126_v2 = vpop.permute.xlu0 %869 }
  0x95   :  { %v2128_v9 = vpop.permute.xlu1 %884  ;;  %v2130_v10 = vpop.permute.xlu0 %879 }
  0x99   :  { %v2132_v11 = vpop.permute.xlu1 %894 }
  0xa3   :  { %v2134_v12 = vpop.permute.xlu0 %889 }
  0xa6   :  { %v2136_v13 = vpop.permute.xlu1 %904 }
  0xa7   :  { %v2138_v14 = vpop.permute.xlu0 %899 }
  0xab   :  { %v2140_v15 = vpop.permute.xlu1 %914  ;;  %v2142_v16 = vpop.permute.xlu0 %909 }
  0xaf   :  { %v925_v17 = vpop.permute.xlu1 %924  ;;  %v920_v18 = vpop.permute.xlu0 %919 }
  0xb3   :  { %v935_v42 = vpop.permute.xlu1 %934  ;;  %v930_v43 = vpop.permute.xlu0 %929 }
  0xf5   :  { %v412_v20 = vpop.f32.mrb[0].mxu0  ;;  %v492_v21 = vpop.f32.mrb[0].mxu1 }
  0xf6   :  { %v997_v22 = vmul.f32 %v840_v3, %v412_v20  ;;  %v1013_v23 = vmul.f32 %v920_v18, %v492_v21  ;;  %v414_v24 = vpop.f32.mrb[1].mxu0  ;;  %v494_v25 = vpop.f32.mrb[1].mxu1 }
  0xf7   :  { %v773_v26 = vadd.f32 %v2147_v19, %v414_v24  ;;  %v789_v27 = vadd.f32 %v2147_v19, %v494_v25  ;;  %v416_v28 = vpop.f32.mrb[2].mxu0  ;;  %v496_v29 = vpop.f32.mrb[2].mxu1 }
  0xf8   :  { %v998_v30 = vmul.f32 %v845_v5, %v416_v28  ;;  %v1577_v31 = vpack.c.bf16 %v416_v28, %v412_v20  ;;  %v1014_v32 = vmul.f32 %v925_v17, %v496_v29  ;;  %v1617_v33 = vpack.c.bf16 %v496_v29, %v492_v21  ;;  %v418_v34 = vpop.f32.mrb[3].mxu0  ;;  %v498_v35 = vpop.f32.mrb[3].mxu1 }
  0xf9   :  { %v1029_v36 = vsub.f32 %v773_v26, %v997_v22  ;;  %v1045_v37 = vsub.f32 %v789_v27, %v1013_v23  ;;  %v774_v38 = vadd.f32 %v2147_v19, %v418_v34  ;;  %v790_v39 = vadd.f32 %v2147_v19, %v498_v35  ;;  %v945_v17 = vpop.permute.xlu1 %944  ;;  %v940_v18 = vpop.permute.xlu0 %939 }
  0xfa   :  { %1578 = vst [vmem:[#allocation3] sm:$0xff] %v1577_v31   ;;  %1741 = vst [vmem:[#allocation3 + $0x40] sm:$0xff] %v1617_v33  }
  0xfb   :  { %v1030_v40 = vsub.f32 %v774_v38, %v998_v30  ;;  %v1046_v41 = vsub.f32 %v790_v39, %v1014_v32 }
  0xfd   :  { %v1657_v44 = vpack.c.bf16 %v1030_v40, %v1029_v36  ;;  %v1697_v45 = vpack.c.bf16 %v1046_v41, %v1045_v37  ;;  %v422_v46 = vpop.f32.mrb[4].mxu0  ;;  %v502_v47 = vpop.f32.mrb[4].mxu1 }
  0xfe   :  { %v999_v48 = vmul.f32 %v850_v1, %v422_v46  ;;  %v1015_v49 = vmul.f32 %v930_v43, %v502_v47  ;;  %v424_v50 = vpop.f32.mrb[5].mxu0  ;;  %v504_v51 = vpop.f32.mrb[5].mxu1 }
  0xff   :  { %1658 = vst [vmem:[#allocation5] sm:$0xff] %v1657_v44   ;;  %1756 = vst [vmem:[#allocation5 + $0x40] sm:$0xff] %v1697_v45   ;;  %v775_v52 = vadd.f32 %v2147_v19, %v424_v50  ;;  %v791_v53 = vadd.f32 %v2147_v19, %v504_v51  ;;  %v426_v54 = vpop.f32.mrb[6].mxu0  ;;  %v506_v55 = vpop.f32.mrb[6].mxu1 }
 0x100   :  { %v1000_v56 = vmul.f32 %v855_v4, %v426_v54  ;;  %v1582_v57 = vpack.c.bf16 %v426_v54, %v422_v46  ;;  %v1016_v58 = vmul.f32 %v935_v42, %v506_v55  ;;  %v1622_v59 = vpack.c.bf16 %v506_v55, %v502_v47  ;;  %v428_v60 = vpop.f32.mrb[7].mxu0  ;;  %v508_v61 = vpop.f32.mrb[7].mxu1 }
 0x101   :  { %v1031_v62 = vsub.f32 %v775_v52, %v999_v48  ;;  %v1047_v63 = vsub.f32 %v791_v53, %v1015_v49  ;;  %v776_v0 = vadd.f32 %v2147_v19, %v428_v60  ;;  %v792_v1 = vadd.f32 %v2147_v19, %v508_v61  ;;  %v955_v42 = vpop.permute.xlu1 %954  ;;  %v950_v43 = vpop.permute.xlu0 %949 }
 0x102   :  { %1734 = vst [vmem:[#allocation3 + $0x8] sm:$0xff] %v1582_v57   ;;  %1742 = vst [vmem:[#allocation3 + $0x48] sm:$0xff] %v1622_v59  }
 0x103   :  { %v1032_v3 = vsub.f32 %v776_v0, %v1000_v56  ;;  %v1048_v5 = vsub.f32 %v792_v1, %v1016_v58 }
 0x105   :  { %v1662_v20 = vpack.c.bf16 %v1032_v3, %v1031_v62  ;;  %v1702_v21 = vpack.c.bf16 %v1048_v5, %v1047_v63  ;;  %v432_v4 = vpop.f32.mrb[8].mxu0  ;;  %v512_v22 = vpop.f32.mrb[8].mxu1 }
 0x106   :  { %v1001_v23 = vmul.f32 %v2122_v7, %v432_v4  ;;  %v1017_v24 = vmul.f32 %v940_v18, %v512_v22  ;;  %v434_v25 = vpop.f32.mrb[9].mxu0  ;;  %v514_v26 = vpop.f32.mrb[9].mxu1 }
 0x107   :  { %1749 = vst [vmem:[#allocation5 + $0x8] sm:$0xff] %v1662_v20   ;;  %1757 = vst [vmem:[#allocation5 + $0x48] sm:$0xff] %v1702_v21   ;;  %v777_v27 = vadd.f32 %v2147_v19, %v434_v25  ;;  %v793_v28 = vadd.f32 %v2147_v19, %v514_v26  ;;  %v436_v29 = vpop.f32.mrb[10].mxu0  ;;  %v516_v30 = vpop.f32.mrb[10].mxu1 }
 0x108   :  { %v1002_v31 = vmul.f32 %v2120_v6, %v436_v29  ;;  %v1587_v32 = vpack.c.bf16 %v436_v29, %v432_v4  ;;  %v1018_v33 = vmul.f32 %v945_v17, %v516_v30  ;;  %v1627_v34 = vpack.c.bf16 %v516_v30, %v512_v22  ;;  %v438_v35 = vpop.f32.mrb[11].mxu0  ;;  %v518_v36 = vpop.f32.mrb[11].mxu1 }
 0x109   :  { %v1033_v37 = vsub.f32 %v777_v27, %v1001_v23  ;;  %v1049_v7 = vsub.f32 %v793_v28, %v1017_v24  ;;  %v778_v38 = vadd.f32 %v2147_v19, %v438_v35  ;;  %v794_v39 = vadd.f32 %v2147_v19, %v518_v36  ;;  %v965_v3 = vpop.permute.xlu1 %964  ;;  %v960_v5 = vpop.permute.xlu0 %959 }
 0x10a   :  { %1735 = vst [vmem:[#allocation3 + $0x10] sm:$0xff] %v1587_v32   ;;  %1743 = vst [vmem:[#allocation3 + $0x50] sm:$0xff] %v1627_v34  }
 0x10b   :  { %v1034_v40 = vsub.f32 %v778_v38, %v1002_v31  ;;  %v1050_v41 = vsub.f32 %v794_v39, %v1018_v33 }
 0x10d   :  { %v1667_v44 = vpack.c.bf16 %v1034_v40, %v1033_v37  ;;  %v1707_v45 = vpack.c.bf16 %v1050_v41, %v1049_v7  ;;  %v442_v6 = vpop.f32.mrb[12].mxu0  ;;  %v522_v46 = vpop.f32.mrb[12].mxu1 }
 0x10e   :  { %v1003_v47 = vmul.f32 %v2126_v2, %v442_v6  ;;  %v1019_v48 = vmul.f32 %v950_v43, %v522_v46  ;;  %v444_v49 = vpop.f32.mrb[13].mxu0  ;;  %v524_v50 = vpop.f32.mrb[13].mxu1 }
 0x10f   :  { %1750 = vst [vmem:[#allocation5 + $0x10] sm:$0xff] %v1667_v44   ;;  %1758 = vst [vmem:[#allocation5 + $0x50] sm:$0xff] %v1707_v45   ;;  %v779_v51 = vadd.f32 %v2147_v19, %v444_v49  ;;  %v795_v52 = vadd.f32 %v2147_v19, %v524_v50  ;;  %v446_v53 = vpop.f32.mrb[14].mxu0  ;;  %v526_v54 = vpop.f32.mrb[14].mxu1 }
 0x110   :  { %v1004_v55 = vmul.f32 %v2124_v8, %v446_v53  ;;  %v1592_v56 = vpack.c.bf16 %v446_v53, %v442_v6  ;;  %v1020_v57 = vmul.f32 %v955_v42, %v526_v54  ;;  %v1632_v58 = vpack.c.bf16 %v526_v54, %v522_v46  ;;  %v448_v59 = vpop.f32.mrb[15].mxu0  ;;  %v528_v60 = vpop.f32.mrb[15].mxu1 }
 0x111   :  { %v1035_v61 = vsub.f32 %v779_v51, %v1003_v47  ;;  %v1051_v2 = vsub.f32 %v795_v52, %v1019_v48  ;;  %v780_v62 = vadd.f32 %v2147_v19, %v448_v59  ;;  %v796_v63 = vadd.f32 %v2147_v19, %v528_v60  ;;  %v975_v38 = vpop.permute.xlu1 %974  ;;  %v970_v39 = vpop.permute.xlu0 %969 }
 0x112   :  { %1736 = vst [vmem:[#allocation3 + $0x18] sm:$0xff] %v1592_v56   ;;  %1744 = vst [vmem:[#allocation3 + $0x58] sm:$0xff] %v1632_v58  }
 0x113   :  { %v1036_v0 = vsub.f32 %v780_v62, %v1004_v55  ;;  %v1052_v1 = vsub.f32 %v796_v63, %v1020_v57 }
 0x115   :  { %v1672_v17 = vpack.c.bf16 %v1036_v0, %v1035_v61  ;;  %v1712_v18 = vpack.c.bf16 %v1052_v1, %v1051_v2  ;;  %v452_v8 = vpop.f32.mrb[16].mxu0  ;;  %v532_v20 = vpop.f32.mrb[16].mxu1 }
 0x116   :  { %v1005_v21 = vmul.f32 %v2130_v10, %v452_v8  ;;  %v1021_v4 = vmul.f32 %v960_v5, %v532_v20  ;;  %v454_v22 = vpop.f32.mrb[17].mxu0  ;;  %v534_v23 = vpop.f32.mrb[17].mxu1 }
 0x117   :  { %1751 = vst [vmem:[#allocation5 + $0x18] sm:$0xff] %v1672_v17   ;;  %1759 = vst [vmem:[#allocation5 + $0x58] sm:$0xff] %v1712_v18   ;;  %v781_v24 = vadd.f32 %v2147_v19, %v454_v22  ;;  %v797_v25 = vadd.f32 %v2147_v19, %v534_v23  ;;  %v456_v26 = vpop.f32.mrb[18].mxu0  ;;  %v536_v27 = vpop.f32.mrb[18].mxu1 }
 0x118   :  { %v1006_v28 = vmul.f32 %v2128_v9, %v456_v26  ;;  %v1597_v29 = vpack.c.bf16 %v456_v26, %v452_v8  ;;  %v1022_v30 = vmul.f32 %v965_v3, %v536_v27  ;;  %v1637_v31 = vpack.c.bf16 %v536_v27, %v532_v20  ;;  %v458_v32 = vpop.f32.mrb[19].mxu0  ;;  %v538_v33 = vpop.f32.mrb[19].mxu1 }
 0x119   :  { %v1037_v34 = vsub.f32 %v781_v24, %v1005_v21  ;;  %v1053_v10 = vsub.f32 %v797_v25, %v1021_v4  ;;  %v782_v35 = vadd.f32 %v2147_v19, %v458_v32  ;;  %v798_v36 = vadd.f32 %v2147_v19, %v538_v33  ;;  %v985_v61 = vpop.permute.xlu1 %984  ;;  %v980_v2 = vpop.permute.xlu0 %979 }
 0x11a   :  { %1737 = vst [vmem:[#allocation3 + $0x20] sm:$0xff] %v1597_v29   ;;  %1745 = vst [vmem:[#allocation3 + $0x60] sm:$0xff] %v1637_v31  }
 0x11b   :  { %v1038_v37 = vsub.f32 %v782_v35, %v1006_v28  ;;  %v1054_v7 = vsub.f32 %v798_v36, %v1022_v30 }
 0x11d   :  { %v1677_v40 = vpack.c.bf16 %v1038_v37, %v1037_v34  ;;  %v1717_v41 = vpack.c.bf16 %v1054_v7, %v1053_v10  ;;  %v462_v9 = vpop.f32.mrb[20].mxu0  ;;  %v542_v42 = vpop.f32.mrb[20].mxu1 }
 0x11e   :  { %v1007_v43 = vmul.f32 %v2134_v12, %v462_v9  ;;  %v1023_v44 = vmul.f32 %v970_v39, %v542_v42  ;;  %v464_v45 = vpop.f32.mrb[21].mxu0  ;;  %v544_v6 = vpop.f32.mrb[21].mxu1 }
 0x11f   :  { %1752 = vst [vmem:[#allocation5 + $0x20] sm:$0xff] %v1677_v40   ;;  %1760 = vst [vmem:[#allocation5 + $0x60] sm:$0xff] %v1717_v41   ;;  %v783_v46 = vadd.f32 %v2147_v19, %v464_v45  ;;  %v799_v47 = vadd.f32 %v2147_v19, %v544_v6  ;;  %v466_v48 = vpop.f32.mrb[22].mxu0  ;;  %v546_v49 = vpop.f32.mrb[22].mxu1 }
 0x120   :  { %v1008_v50 = vmul.f32 %v2132_v11, %v466_v48  ;;  %v1602_v51 = vpack.c.bf16 %v466_v48, %v462_v9  ;;  %v1024_v52 = vmul.f32 %v975_v38, %v546_v49  ;;  %v1642_v53 = vpack.c.bf16 %v546_v49, %v542_v42  ;;  %v468_v54 = vpop.f32.mrb[23].mxu0  ;;  %v548_v55 = vpop.f32.mrb[23].mxu1 }
 0x121   :  { %v1039_v56 = vsub.f32 %v783_v46, %v1007_v43  ;;  %v1055_v12 = vsub.f32 %v799_v47, %v1023_v44  ;;  %v784_v57 = vadd.f32 %v2147_v19, %v468_v54  ;;  %v800_v58 = vadd.f32 %v2147_v19, %v548_v55  ;;  %v995_v32 = vpop.permute.xlu1 %994  ;;  %v990_v33 = vpop.permute.xlu0 %989 }
 0x122   :  { %1738 = vst [vmem:[#allocation3 + $0x28] sm:$0xff] %v1602_v51   ;;  %1746 = vst [vmem:[#allocation3 + $0x68] sm:$0xff] %v1642_v53  }
 0x123   :  { %v1040_v59 = vsub.f32 %v784_v57, %v1008_v50  ;;  %v1056_v60 = vsub.f32 %v800_v58, %v1024_v52 }
 0x125   :  { %v1682_v62 = vpack.c.bf16 %v1040_v59, %v1039_v56  ;;  %v1722_v63 = vpack.c.bf16 %v1056_v60, %v1055_v12  ;;  %v472_v11 = vpop.f32.mrb[24].mxu0  ;;  %v552_v0 = vpop.f32.mrb[24].mxu1 }
 0x126   :  { %v1009_v1 = vmul.f32 %v2138_v14, %v472_v11  ;;  %v1025_v3 = vmul.f32 %v980_v2, %v552_v0  ;;  %v474_v5 = vpop.f32.mrb[25].mxu0  ;;  %v554_v17 = vpop.f32.mrb[25].mxu1 }
 0x127   :  { %1753 = vst [vmem:[#allocation5 + $0x28] sm:$0xff] %v1682_v62   ;;  %1761 = vst [vmem:[#allocation5 + $0x68] sm:$0xff] %v1722_v63   ;;  %v785_v18 = vadd.f32 %v2147_v19, %v474_v5  ;;  %v801_v8 = vadd.f32 %v2147_v19, %v554_v17  ;;  %v476_v20 = vpop.f32.mrb[26].mxu0  ;;  %v556_v21 = vpop.f32.mrb[26].mxu1 }
 0x128   :  { %v1010_v4 = vmul.f32 %v2136_v13, %v476_v20  ;;  %v1607_v22 = vpack.c.bf16 %v476_v20, %v472_v11  ;;  %v1026_v23 = vmul.f32 %v985_v61, %v556_v21  ;;  %v1647_v24 = vpack.c.bf16 %v556_v21, %v552_v0  ;;  %v478_v25 = vpop.f32.mrb[27].mxu0  ;;  %v558_v26 = vpop.f32.mrb[27].mxu1 }
 0x129   :  { %v1041_v27 = vsub.f32 %v785_v18, %v1009_v1  ;;  %v1057_v14 = vsub.f32 %v801_v8, %v1025_v3  ;;  %v786_v28 = vadd.f32 %v2147_v19, %v478_v25  ;;  %v802_v29 = vadd.f32 %v2147_v19, %v558_v26 }
 0x12a   :  { %1739 = vst [vmem:[#allocation3 + $0x30] sm:$0xff] %v1607_v22   ;;  %1747 = vst [vmem:[#allocation3 + $0x70] sm:$0xff] %v1647_v24  }
 0x12b   :  { %v1042_v30 = vsub.f32 %v786_v28, %v1010_v4  ;;  %v1058_v31 = vsub.f32 %v802_v29, %v1026_v23 }
 0x12d   :  { %v1687_v13 = vpack.c.bf16 %v1042_v30, %v1041_v27  ;;  %v1727_v34 = vpack.c.bf16 %v1058_v31, %v1057_v14  ;;  %v482_v10 = vpop.f32.mrb[28].mxu0  ;;  %v562_v35 = vpop.f32.mrb[28].mxu1 }
 0x12e   :  { %v1011_v36 = vmul.f32 %v2142_v16, %v482_v10  ;;  %v1027_v37 = vmul.f32 %v990_v33, %v562_v35  ;;  %v484_v7 = vpop.f32.mrb[29].mxu0  ;;  %v564_v38 = vpop.f32.mrb[29].mxu1 }
 0x12f   :  { %1754 = vst [vmem:[#allocation5 + $0x30] sm:$0xff] %v1687_v13   ;;  %1762 = vst [vmem:[#allocation5 + $0x70] sm:$0xff] %v1727_v34   ;;  %v787_v39 = vadd.f32 %v2147_v19, %v484_v7  ;;  %v803_v40 = vadd.f32 %v2147_v19, %v564_v38  ;;  %v486_v41 = vpop.f32.mrb[30].mxu0  ;;  %v566_v9 = vpop.f32.mrb[30].mxu1 }
 0x130   :  { %v1012_v42 = vmul.f32 %v2140_v15, %v486_v41  ;;  %v1612_v43 = vpack.c.bf16 %v486_v41, %v482_v10  ;;  %v1028_v44 = vmul.f32 %v995_v32, %v566_v9  ;;  %v1652_v16 = vpack.c.bf16 %v566_v9, %v562_v35  ;;  %v488_v45 = vpop.f32.mrb[31].mxu0  ;;  %v568_v6 = vpop.f32.mrb[31].mxu1 }
 0x131   :  { %v1043_v46 = vsub.f32 %v787_v39, %v1011_v36  ;;  %v1059_v47 = vsub.f32 %v803_v40, %v1027_v37  ;;  %v788_v48 = vadd.f32 %v2147_v19, %v488_v45  ;;  %v804_v49 = vadd.f32 %v2147_v19, %v568_v6 }
 0x132   :  { %1740 = vst [vmem:[#allocation3 + $0x38] sm:$0xff] %v1612_v43   ;;  %1748 = vst [vmem:[#allocation3 + $0x78] sm:$0xff] %v1652_v16  }
 0x133   :  { %v1044_v50 = vsub.f32 %v788_v48, %v1012_v42  ;;  %v1060_v15 = vsub.f32 %v804_v49, %v1028_v44 }
 0x134   :  { %1838 = shalt.err (!%p1835_p4)
}
 0x135   :  { %s1839_s23 = scalar_lea.hbm %s2228_s4, 2048 }
 0x136   :  { %p1840_p5 = scmp.ne.s32.totalorder %s2228_s4, %s1839_s23  ;;  %p1843_p6 = scmp.lt.u32.totalorder %s1839_s23, %s2228_s4 }
 0x138   :  { %p1845_p7 = pnand %p1843_p6, %p1840_p5 }
 0x13a   :  { %1848 = shalt.err (!%p1845_p7)
}
 0x13b   :  { %s1878_s28 = smov 64   ;;  %s1879_s29 = smov 4   ;;  %v1692_v19 = vpack.c.bf16 %v1044_v50, %v1043_v46  ;;  %v1732_v51 = vpack.c.bf16 %v1060_v15, %v1059_v47 }
 0x13c   :  { %1392 = dma.vmem_to_hbm [thread:$0]  %s2190_s18, 2048, %s2228_s4, [#allocation4], %s1878_s28, %s1878_s28, %s1879_s29  }
 0x13d   :  { %1755 = vst [vmem:[#allocation5 + $0x38] sm:$0xff] %v1692_v19   ;;  %1763 = vst [vmem:[#allocation5 + $0x78] sm:$0xff] %v1732_v51   ;;  %s1849_s7 = scalar_lea.vmem %s1399_s19, 2048  ;;  %p1854_p9 = scmp.lt.s32.totalorder %s1399_s19, %s1399_s19 }
 0x13e   :  { %p1850_p8 = scmp.ne.s32.totalorder %s1399_s19, %s1849_s7  ;;  %p1855_p10 = scmp.lt.s32.totalorder %s1849_s7, %s1849_s7 }
 0x140   :  { %p1856_p11 = por %p1855_p10, %p1854_p9 }
 0x142   :  { %p1857_p12 = pnand %p1856_p11, %p1850_p8 }
 0x144   :  { %1860 = shalt.err (!%p1857_p12)
}
 0x145   :  { %s1861_s10 = scalar_lea.hbm %s2229_s5, 2048 }
 0x146   :  { %p1862_p13 = scmp.ne.s32.totalorder %s2229_s5, %s1861_s10  ;;  %p1865_p0 = scmp.lt.u32.totalorder %s1861_s10, %s2229_s5 }
 0x148   :  { %p1867_p1 = pnand %p1865_p0, %p1862_p13 }
 0x14a   :  { %1870 = shalt.err (!%p1867_p1)
}
 0x14b   :  { %1404 = dma.vmem_to_hbm [thread:$0]  %s1399_s19, 2048, %s2229_s5, [#allocation6], %s1878_s28, %s1878_s28, %s1879_s29  }
 0x14c   :  { %1871 = dma.done.wait [#allocation4], 2048  }
 0x14d   :  { %1872 = vsyncadd [#allocation4], 4294965248 }
 0x14e   :  { %1873 = dma.done.wait [#allocation6], 2048  }
 0x14f   :  { %1874 = vsyncadd [#allocation6], 4294965248 }
 0x150   :  { %1411 = vsyncpa [#allocation4], 1 }
 0x151   :  { %1412 = vsyncpa [#allocation6], 1 }

</bundles_post_ra>
